<compile_context>
chip_gen: v7x
topology: tpu7x:2x2x1
jax: 0.10.0
libtpu: 0.0.40
codegen_flags: <defaults>
</compile_context>

<pallas_src>
import jax
import jax.numpy as jnp
from jax.experimental import pallas as pl
from jax.experimental.pallas import tpu as pltpu

EPS = 1e-5


def _pointnet_kernel(x_ref,
                     w1_ref, w2_ref, w3_ref, w4_ref, w5_ref,
                     b1_ref, b2_ref, b3_ref, b4_ref, b5_ref,
                     o_ref):
    """One (point_dim, tile_n) column tile through the full 5-stage shared MLP.

    Activations are kept channels-first (C, tile_n) so the final (256, tile_n)
    tile is stored straight into the (B, 256, N) output with no transpose.
    """
    h = x_ref[0]                                        # (point_dim, tile_n) f32

    def stage(h, w_ref, b_ref):
        # 1x1 conv (BN scale pre-folded into W): (Cout,Cin) @ (Cin,tile_n).
        # Cast to the matmul dtype (f32 or bf16) once per stage at the dot;
        # accumulate + shift + ReLU stay in f32.
        y = jnp.dot(w_ref[...], h.astype(w_ref.dtype),
                    preferred_element_type=jnp.float32)
        return jnp.maximum(y + b_ref[...], 0.0)         # b_ref is (Cout, 1)

    h = stage(h, w1_ref, b1_ref)
    h = stage(h, w2_ref, b2_ref)
    h = stage(h, w3_ref, b3_ref)
    h = stage(h, w4_ref, b4_ref)
    h = stage(h, w5_ref, b5_ref)

    o_ref[0] = h.astype(o_ref.dtype)                    # (256, tile_n)


def base_pointnet_forward(x, params, *, tile_n=1024,
                          matmul_dtype=jnp.float32, out_dtype=jnp.float32):
    """x: (B, N, point_dim) float32 -> (B, 256, N) `out_dtype` (matches PyTorch)."""
    B, N, pd = x.shape

    # Fold conv bias + eval-mode BatchNorm into the weights / per-channel shift:
    #   y = gamma * ((W h + b) - mean)/sqrt(var+eps) + beta
    #     = (scale*W) h + (scale*(b-mean) + beta)
    ws, shifts = [], []
    for (w, b, gamma, beta, mean, var) in params:
        scale = gamma / jnp.sqrt(var + EPS)                               # (Cout,)
        ws.append((w * scale[:, None]).astype(matmul_dtype))              # (Cout, Cin)
        shifts.append(((b - mean) * scale + beta)
                      .reshape(-1, 1).astype(jnp.float32))                # (Cout, 1)
    c_out = ws[-1].shape[0]

    # Only the tiny point_dim-channel input is transposed in plain JAX; the
    # 256-channel output is produced in (B, 256, N) layout by the kernel.
    x_cf = jnp.transpose(x, (0, 2, 1))                                    # (B, pd, N)

    # Tile choice: full extent when N is small, else a multiple of 128 lanes
    # (lane-dense stores). Ragged last tile handled via cdiv grid (columns are
    # independent, so padded columns never contaminate valid ones).
    if tile_n >= N:
        tile_n = N
    else:
        tile_n = max(128, (tile_n // 128) * 128)
    grid = (B, pl.cdiv(N, tile_n))

    def const_spec(shape):
        # Small parameter arrays resident in VMEM for every grid step.
        return pl.BlockSpec(shape, lambda b, j: (0, 0))

    in_specs = [pl.BlockSpec((1, pd, tile_n), lambda b, j: (b, 0, j))]
    in_specs += [const_spec(w.shape) for w in ws]
    in_specs += [const_spec(s.shape) for s in shifts]

    return pl.pallas_call(
        _pointnet_kernel,
        out_shape=jax.ShapeDtypeStruct((B, c_out, N), out_dtype),
        grid_spec=pltpu.PrefetchScalarGridSpec(
            num_scalar_prefetch=0,
            grid=grid,
            in_specs=in_specs,
            out_specs=pl.BlockSpec((1, c_out, tile_n), lambda b, j: (b, 0, j)),
        ),
        compiler_params=pltpu.CompilerParams(
            dimension_semantics=("parallel", "parallel")),
    )(x_cf, *ws, *shifts)


def make_params(point_dim, key):
    """Deterministic synthetic parameters mirroring the PyTorch __init__ shapes."""
    dims = [(point_dim, 64), (64, 64), (64, 64), (64, 128), (128, 256)]
    params = []
    for li, (cin, cout) in enumerate(dims):
        k_w, k_b, k_g, k_be, k_m, k_v = jax.random.split(
            jax.random.fold_in(key, li), 6)
        w = jax.random.normal(k_w, (cout, cin), jnp.float32) * 0.1   # Conv1d weight (Cout, Cin, k=1)
        b = jax.random.normal(k_b, (cout,), jnp.float32) * 0.1       # Conv1d bias
        gamma = 1.0 + 0.1 * jax.random.normal(k_g, (cout,), jnp.float32)  # BN weight
        beta = 0.1 * jax.random.normal(k_be, (cout,), jnp.float32)        # BN bias
        mean = 0.1 * jax.random.normal(k_m, (cout,), jnp.float32)         # BN running_mean
        var = jnp.abs(1.0 + 0.1 * jax.random.normal(k_v, (cout,), jnp.float32))  # BN running_var
        params.append((w, b, gamma, beta, mean, var))
    return params


def reference_forward(x, params):
    """Pure-JAX reference of the PyTorch forward (eval-mode BN), f32."""
    h = x  # (B, N, C) channels-last; 1x1 conv == h @ W^T
    for (w, b, gamma, beta, mean, var) in params:
        h = h @ w.T + b
        h = gamma * (h - mean) / jnp.sqrt(var + EPS) + beta
        h = jnp.maximum(h, 0.0)
    return h.transpose(0, 2, 1)  # (B, 256, N)


if __name__ == "__main__":
    key = jax.random.PRNGKey(0)
    B, N, point_dim = 2, 256, 3

    k_x, k_p = jax.random.split(key)
    x = jax.random.normal(k_x, (B, N, point_dim), jnp.float32)
    params = make_params(point_dim, k_p)

    ref = reference_forward(x, params)

    # f32 path, small tile to exercise the multi-block grid (grid = (2, 2)).
    out = base_pointnet_forward(x, params, tile_n=128)
    out = jax.block_until_ready(out)
    assert out.shape == (B, 256, N), out.shape
    assert jnp.allclose(out, ref, atol=1e-4, rtol=1e-3), (
        float(jnp.max(jnp.abs(out - ref))))

    # bf16-matmul path (f32 accumulate), full-extent tile, f32 output.
    out_bf16 = base_pointnet_forward(x, params, matmul_dtype=jnp.bfloat16)
    out_bf16 = jax.block_until_ready(out_bf16)
    assert out_bf16.shape == (B, 256, N), out_bf16.shape
    assert jnp.allclose(out_bf16, ref, atol=1e-1, rtol=1e-1), (
        float(jnp.max(jnp.abs(out_bf16 - ref))))

    print("KERNEL_OK")
</pallas_src>

<mosaic_0001>
module attributes {stable_mosaic.version = 11 : i64} {
  func.func @_pointnet_kernel(%arg0: i32, %arg1: i32, %arg2: memref<1x3x128xf32, #tpu.memory_space<vmem>>, %arg3: memref<64x3xf32, #tpu.memory_space<vmem>>, %arg4: memref<64x64xf32, #tpu.memory_space<vmem>>, %arg5: memref<64x64xf32, #tpu.memory_space<vmem>>, %arg6: memref<128x64xf32, #tpu.memory_space<vmem>>, %arg7: memref<256x128xf32, #tpu.memory_space<vmem>>, %arg8: memref<64x1xf32, #tpu.memory_space<vmem>>, %arg9: memref<64x1xf32, #tpu.memory_space<vmem>>, %arg10: memref<64x1xf32, #tpu.memory_space<vmem>>, %arg11: memref<128x1xf32, #tpu.memory_space<vmem>>, %arg12: memref<256x1xf32, #tpu.memory_space<vmem>>, %arg13: memref<1x256x128xf32, #tpu.memory_space<vmem>>) attributes {dimension_semantics = [#tpu.dimension_semantics<parallel>, #tpu.dimension_semantics<parallel>], iteration_bounds = array<i64: 2, 2>, scalar_prefetch = 0 : i64, scratch_operands = 0 : i64, tpu.core_type = #tpu.core_type<tc>, window_params = [{transform_indices = @transform_0, window_bounds = array<i64: 1, 3, 128>}, {pipeline_mode = #tpu.pipeline_mode<synchronous>, transform_indices = @transform_1, window_bounds = array<i64: 64, 3>}, {pipeline_mode = #tpu.pipeline_mode<synchronous>, transform_indices = @transform_2, window_bounds = array<i64: 64, 64>}, {pipeline_mode = #tpu.pipeline_mode<synchronous>, transform_indices = @transform_3, window_bounds = array<i64: 64, 64>}, {pipeline_mode = #tpu.pipeline_mode<synchronous>, transform_indices = @transform_4, window_bounds = array<i64: 128, 64>}, {pipeline_mode = #tpu.pipeline_mode<synchronous>, transform_indices = @transform_5, window_bounds = array<i64: 256, 128>}, {pipeline_mode = #tpu.pipeline_mode<synchronous>, transform_indices = @transform_6, window_bounds = array<i64: 64, 1>}, {pipeline_mode = #tpu.pipeline_mode<synchronous>, transform_indices = @transform_7, window_bounds = array<i64: 64, 1>}, {pipeline_mode = #tpu.pipeline_mode<synchronous>, transform_indices = @transform_8, window_bounds = array<i64: 64, 1>}, {pipeline_mode = #tpu.pipeline_mode<synchronous>, transform_indices = @transform_9, window_bounds = array<i64: 128, 1>}, {pipeline_mode = #tpu.pipeline_mode<synchronous>, transform_indices = @transform_10, window_bounds = array<i64: 256, 1>}, {transform_indices = @transform_11, window_bounds = array<i64: 1, 256, 128>}]} {
    %c0 = arith.constant 0 : index
    %c0_0 = arith.constant 0 : index
    %c0_1 = arith.constant 0 : index
    %0 = vector.load %arg2[%c0, %c0_0, %c0_1] : memref<1x3x128xf32, #tpu.memory_space<vmem>>, vector<1x3x128xf32>
    %1 = vector.shape_cast %0 : vector<1x3x128xf32> to vector<3x128xf32>
    %c0_2 = arith.constant 0 : index
    %c0_3 = arith.constant 0 : index
    %2 = vector.load %arg3[%c0_2, %c0_3] : memref<64x3xf32, #tpu.memory_space<vmem>>, vector<64x3xf32>
    %cst = arith.constant dense<0.000000e+00> : vector<64x128xf32>
    %3 = tpu.matmul %2, %1, %cst {dimension_numbers = #tpu.dot_dimension_numbers<[1], [0], [0], [1], [0, 0, 1, 1], [], []>} : vector<64x3xf32>, vector<3x128xf32>, vector<64x128xf32> -> vector<64x128xf32>
    %c0_4 = arith.constant 0 : index
    %c0_5 = arith.constant 0 : index
    %4 = vector.load %arg8[%c0_4, %c0_5] : memref<64x1xf32, #tpu.memory_space<vmem>>, vector<64x1xf32>
    %5 = vector.broadcast %4 : vector<64x1xf32> to vector<64x128xf32>
    %6 = arith.addf %3, %5 : vector<64x128xf32>
    %cst_6 = arith.constant 0.000000e+00 : f32
    %7 = vector.broadcast %cst_6 : f32 to vector<64x128xf32>
    %8 = arith.maximumf %6, %7 : vector<64x128xf32>
    %c0_7 = arith.constant 0 : index
    %c0_8 = arith.constant 0 : index
    %9 = vector.load %arg4[%c0_7, %c0_8] : memref<64x64xf32, #tpu.memory_space<vmem>>, vector<64x64xf32>
    %cst_9 = arith.constant dense<0.000000e+00> : vector<64x128xf32>
    %10 = tpu.matmul %9, %8, %cst_9 {dimension_numbers = #tpu.dot_dimension_numbers<[1], [0], [0], [1], [0, 0, 1, 1], [], []>} : vector<64x64xf32>, vector<64x128xf32>, vector<64x128xf32> -> vector<64x128xf32>
    %c0_10 = arith.constant 0 : index
    %c0_11 = arith.constant 0 : index
    %11 = vector.load %arg9[%c0_10, %c0_11] : memref<64x1xf32, #tpu.memory_space<vmem>>, vector<64x1xf32>
    %12 = vector.broadcast %11 : vector<64x1xf32> to vector<64x128xf32>
    %13 = arith.addf %10, %12 : vector<64x128xf32>
    %cst_12 = arith.constant 0.000000e+00 : f32
    %14 = vector.broadcast %cst_12 : f32 to vector<64x128xf32>
    %15 = arith.maximumf %13, %14 : vector<64x128xf32>
    %c0_13 = arith.constant 0 : index
    %c0_14 = arith.constant 0 : index
    %16 = vector.load %arg5[%c0_13, %c0_14] : memref<64x64xf32, #tpu.memory_space<vmem>>, vector<64x64xf32>
    %cst_15 = arith.constant dense<0.000000e+00> : vector<64x128xf32>
    %17 = tpu.matmul %16, %15, %cst_15 {dimension_numbers = #tpu.dot_dimension_numbers<[1], [0], [0], [1], [0, 0, 1, 1], [], []>} : vector<64x64xf32>, vector<64x128xf32>, vector<64x128xf32> -> vector<64x128xf32>
    %c0_16 = arith.constant 0 : index
    %c0_17 = arith.constant 0 : index
    %18 = vector.load %arg10[%c0_16, %c0_17] : memref<64x1xf32, #tpu.memory_space<vmem>>, vector<64x1xf32>
    %19 = vector.broadcast %18 : vector<64x1xf32> to vector<64x128xf32>
    %20 = arith.addf %17, %19 : vector<64x128xf32>
    %cst_18 = arith.constant 0.000000e+00 : f32
    %21 = vector.broadcast %cst_18 : f32 to vector<64x128xf32>
    %22 = arith.maximumf %20, %21 : vector<64x128xf32>
    %c0_19 = arith.constant 0 : index
    %c0_20 = arith.constant 0 : index
    %23 = vector.load %arg6[%c0_19, %c0_20] : memref<128x64xf32, #tpu.memory_space<vmem>>, vector<128x64xf32>
    %cst_21 = arith.constant dense<0.000000e+00> : vector<128x128xf32>
    %24 = tpu.matmul %23, %22, %cst_21 {dimension_numbers = #tpu.dot_dimension_numbers<[1], [0], [0], [1], [0, 0, 1, 1], [], []>} : vector<128x64xf32>, vector<64x128xf32>, vector<128x128xf32> -> vector<128x128xf32>
    %c0_22 = arith.constant 0 : index
    %c0_23 = arith.constant 0 : index
    %25 = vector.load %arg11[%c0_22, %c0_23] : memref<128x1xf32, #tpu.memory_space<vmem>>, vector<128x1xf32>
    %26 = vector.broadcast %25 : vector<128x1xf32> to vector<128x128xf32>
    %27 = arith.addf %24, %26 : vector<128x128xf32>
    %cst_24 = arith.constant 0.000000e+00 : f32
    %28 = vector.broadcast %cst_24 : f32 to vector<128x128xf32>
    %29 = arith.maximumf %27, %28 : vector<128x128xf32>
    %c0_25 = arith.constant 0 : index
    %c0_26 = arith.constant 0 : index
    %30 = vector.load %arg7[%c0_25, %c0_26] : memref<256x128xf32, #tpu.memory_space<vmem>>, vector<256x128xf32>
    %cst_27 = arith.constant dense<0.000000e+00> : vector<256x128xf32>
    %31 = tpu.matmul %30, %29, %cst_27 {dimension_numbers = #tpu.dot_dimension_numbers<[1], [0], [0], [1], [0, 0, 1, 1], [], []>} : vector<256x128xf32>, vector<128x128xf32>, vector<256x128xf32> -> vector<256x128xf32>
    %c0_28 = arith.constant 0 : index
    %c0_29 = arith.constant 0 : index
    %32 = vector.load %arg12[%c0_28, %c0_29] : memref<256x1xf32, #tpu.memory_space<vmem>>, vector<256x1xf32>
    %33 = vector.broadcast %32 : vector<256x1xf32> to vector<256x128xf32>
    %34 = arith.addf %31, %33 : vector<256x128xf32>
    %cst_30 = arith.constant 0.000000e+00 : f32
    %35 = vector.broadcast %cst_30 : f32 to vector<256x128xf32>
    %36 = arith.maximumf %34, %35 : vector<256x128xf32>
    %c0_31 = arith.constant 0 : index
    %c0_32 = arith.constant 0 : index
    %c0_33 = arith.constant 0 : index
    %37 = vector.load %arg13[%c0_31, %c0_32, %c0_33] : memref<1x256x128xf32, #tpu.memory_space<vmem>>, vector<1x256x128xf32>
    %38 = vector.shape_cast %37 : vector<1x256x128xf32> to vector<256x128xf32>
    %39 = vector.shape_cast %36 : vector<256x128xf32> to vector<1x256x128xf32>
    tpu.vector_store %arg13[%c0_31, %c0_32, %c0_33], %39 {strides = array<i32>} : memref<1x256x128xf32, #tpu.memory_space<vmem>>, vector<1x256x128xf32>,
    return
  }
  func.func @transform_0(%arg0: i32, %arg1: i32) -> (i32, i32, i32) {
    %c0_i32 = arith.constant 0 : i32
    %c0_i32_0 = arith.constant 0 : i32
    return %arg0, %c0_i32, %arg1 : i32, i32, i32
  }
  func.func @transform_1(%arg0: i32, %arg1: i32) -> (i32, i32) {
    %c0_i32 = arith.constant 0 : i32
    %c0_i32_0 = arith.constant 0 : i32
    %c0_i32_1 = arith.constant 0 : i32
    return %c0_i32, %c0_i32_0 : i32, i32
  }
  func.func @transform_2(%arg0: i32, %arg1: i32) -> (i32, i32) {
    %c0_i32 = arith.constant 0 : i32
    %c0_i32_0 = arith.constant 0 : i32
    %c0_i32_1 = arith.constant 0 : i32
    return %c0_i32, %c0_i32_0 : i32, i32
  }
  func.func @transform_3(%arg0: i32, %arg1: i32) -> (i32, i32) {
    %c0_i32 = arith.constant 0 : i32
    %c0_i32_0 = arith.constant 0 : i32
    %c0_i32_1 = arith.constant 0 : i32
    return %c0_i32, %c0_i32_0 : i32, i32
  }
  func.func @transform_4(%arg0: i32, %arg1: i32) -> (i32, i32) {
    %c0_i32 = arith.constant 0 : i32
    %c0_i32_0 = arith.constant 0 : i32
    %c0_i32_1 = arith.constant 0 : i32
    return %c0_i32, %c0_i32_0 : i32, i32
  }
  func.func @transform_5(%arg0: i32, %arg1: i32) -> (i32, i32) {
    %c0_i32 = arith.constant 0 : i32
    %c0_i32_0 = arith.constant 0 : i32
    %c0_i32_1 = arith.constant 0 : i32
    return %c0_i32, %c0_i32_0 : i32, i32
  }
  func.func @transform_6(%arg0: i32, %arg1: i32) -> (i32, i32) {
    %c0_i32 = arith.constant 0 : i32
    %c0_i32_0 = arith.constant 0 : i32
    %c0_i32_1 = arith.constant 0 : i32
    return %c0_i32, %c0_i32_0 : i32, i32
  }
  func.func @transform_7(%arg0: i32, %arg1: i32) -> (i32, i32) {
    %c0_i32 = arith.constant 0 : i32
    %c0_i32_0 = arith.constant 0 : i32
    %c0_i32_1 = arith.constant 0 : i32
    return %c0_i32, %c0_i32_0 : i32, i32
  }
  func.func @transform_8(%arg0: i32, %arg1: i32) -> (i32, i32) {
    %c0_i32 = arith.constant 0 : i32
    %c0_i32_0 = arith.constant 0 : i32
    %c0_i32_1 = arith.constant 0 : i32
    return %c0_i32, %c0_i32_0 : i32, i32
  }
  func.func @transform_9(%arg0: i32, %arg1: i32) -> (i32, i32) {
    %c0_i32 = arith.constant 0 : i32
    %c0_i32_0 = arith.constant 0 : i32
    %c0_i32_1 = arith.constant 0 : i32
    return %c0_i32, %c0_i32_0 : i32, i32
  }
  func.func @transform_10(%arg0: i32, %arg1: i32) -> (i32, i32) {
    %c0_i32 = arith.constant 0 : i32
    %c0_i32_0 = arith.constant 0 : i32
    %c0_i32_1 = arith.constant 0 : i32
    return %c0_i32, %c0_i32_0 : i32, i32
  }
  func.func @transform_11(%arg0: i32, %arg1: i32) -> (i32, i32, i32) {
    %c0_i32 = arith.constant 0 : i32
    %c0_i32_0 = arith.constant 0 : i32
    return %arg0, %c0_i32, %arg1 : i32, i32, i32
  }
}

</mosaic_0001>

<bundles_post_ra>
// kernel: tpu_custom_call.1
= control target key start
LH: loop header
LB: loop body
LE: loop exit
PB: predicated region body
PF: predicated region fallthrough
CT: control target
= control target key end

     0   :  { %16 = vsyncpa [#allocation3], 0  ;;  %s3313_s0 = inlined_call_operand.vmem [shape: f32[2,3,256], index: 0, kind: input, shape index: {}]   ;;  %s3314_s1 = inlined_call_operand.vmem [shape: f32[64,3], index: 1, kind: input, shape index: {}]   ;;  %s3315_s2 = inlined_call_operand.vmem [shape: f32[64,64], index: 2, kind: input, shape index: {}]   ;;  %s3316_s3 = inlined_call_operand.vmem [shape: f32[64,64], index: 3, kind: input, shape index: {}]   ;;  %s3317_s4 = inlined_call_operand.vmem [shape: f32[128,64], index: 4, kind: input, shape index: {}]   ;;  %s3318_s5 = inlined_call_operand.vmem [shape: f32[256,128], index: 5, kind: input, shape index: {}]   ;;  %s3319_s6 = inlined_call_operand.vmem [shape: f32[64,1], index: 6, kind: input, shape index: {}]   ;;  %s3320_s7 = inlined_call_operand.vmem [shape: f32[64,1], index: 7, kind: input, shape index: {}]   ;;  %s3321_s8 = inlined_call_operand.vmem [shape: f32[64,1], index: 8, kind: input, shape index: {}]   ;;  %s3322_s9 = inlined_call_operand.vmem [shape: f32[128,1], index: 9, kind: input, shape index: {}]   ;;  %s3323_s10 = inlined_call_operand.vmem [shape: f32[256,1], index: 10, kind: input, shape index: {}]   ;;  %s3324_s11 = inlined_call_operand.hbm [shape: f32[2,256,256], index: 11, kind: output, shape index: {}]  }
   0x1   :  { %18 = vsyncpa [#allocation3 + $0x1], 0  ;;  %s2617_s17 = smov 0   ;;  %s2619_s18 = smov 0  }
   0x2   :  { %s2621_s19 = smov 0   ;;  %s2623_s20 = smov 0  }
   0x3   :  { %s2625_s21 = smov 0   ;;  %s2627_s22 = smov 0  }
   0x4   :  { %s2629_s23 = smov 0   ;;  %s2631_s24 = smov 0  }
   0x5 LB: > { %3331 = sst [smem:[#allocation5_spill]] %s2530_s19  ;;  %s1926_s25 = sadd.s32 4294967295, %s2550_s24   ;;  %s2550_s24 = sphi %s2631_s24, %s24_s24   ;;  %s2546_s23 = sphi %s2629_s23, %s3346_s23   ;;  %s2542_s22 = sphi %s2627_s22, %s3345_s22   ;;  %s2538_s21 = sphi %s2625_s21, %s3344_s21   ;;  %s2534_s20 = sphi %s2623_s20, %s3343_s20   ;;  %s2530_s19 = sphi %s2621_s19, %s3342_s19   ;;  %s2526_s18 = sphi %s2619_s18, %s3348_s18   ;;  %s2522_s17 = sphi %s2617_s17, %s3347_s17  }
   0x6   : > { %3332 = sst [smem:[#allocation6_spill]] %s2542_s22  ;;  %s1927_s26 = sadd.s32 4294967294, %s2550_s24  }
   0x7   : > { %3333 = sst [smem:[#allocation7_spill]] %s2546_s23  ;;  %s33_s27 = sadd.s32 1, %s2542_s22 }
   0x8   : > { %p34_p0 = scmp.ge.s32.totalorder %s33_s27, 2  ;;  %s36_s28 = sadd.s32 1, %s2546_s23 }
   0x9   : > { %p293_p1 = scmp.ne.s32.totalorder %s2530_s19, %s2526_s18  ;;  %p294_p2 = scmp.eq.s32.totalorder %s1926_s25, 3 }
   0xa   : > { %s3350_s27 = smov (%p34_p0, %s33_s27), 0  ;;  %s3352_s28 = smov (!%p34_p0, %s36_s28), %s2546_s23 }
   0xb   : > { %3334 = sst [smem:[#allocation8_spill]] %s3350_s27  ;;  %s279_s29 = ssub.s32 %s2542_s22, %s3350_s27 }
   0xc   : > { %p2668_p3 = por %p294_p2, %p293_p1  ;;  %p38_p4 = scmp.ge.s32.totalorder %s3352_s28, 2 }
   0xd   : > { %p299_p5 = scmp.ne.s32.totalorder %s2526_s18, %s2522_s17  ;;  %p300_p6 = scmp.eq.s32.totalorder %s1927_s26, 3 }
   0xe   : > { %p1930_p7 = scmp.ge.s32.totalorder %s2550_s24, 1  ;;  %s3354_s28 = smov (%p38_p4, %s3352_s28), 0 }
   0xf   : > { %3336 = sst [smem:[#allocation9_spill]] %s3354_s28  ;;  %p2677_p8 = por %p300_p6, %p299_p5 }
  0x10   : > { %p359_p9 = scmp.lt.s32.totalorder %s2550_s24, 5  ;;  %s278_s13 = ssub.s32 %s2546_s23, %s3354_s28 }
  0x11   : > { %s3337_s12 = scalar_select %p2677_p8, 1, 0 }
  0x12   : > { %s283_s14 = sadd.s32 1, %s2530_s19  ;;  %s280_s15 = sor.u32 %s279_s29, %s278_s13 }
  0x13   : > { %3338 = sst [smem:[#allocation10_spill]] %s3337_s12  ;;  %p360_p10 = pnand %p1930_p7, %p359_p9 }
  0x14   : > { %p281_p11 = scmp.eq.s32.totalorder %s280_s15, 0  ;;  %v421_v0 = vld [vmem:[%s3319_s6 + $0x10] sm:$0xff] (!%p360_p10)  ;;  %v419_v1 = vld [vmem:[%s3319_s6] sm:$0xff] (!%p360_p10)  ;;  %p402_p12 = scmp.lt.s32.totalorder (!%p360_p10), %s2538_s21, 1  ;;  %v2552_v2 = vmov (!%p360_p10), 0   ;;  %vm467_vm0 = vcmask (!%p360_p10), 23552  }
  0x15   : > { %363 = sbr.rel (%p360_p10) target bundleno = 1262 (0x4ee), region = 64  ;;  %p404_p13 = scmp.lt.s32.totalorder (!%p360_p10), %s2534_s20, 1  ;;  %2455 = vset.pattern.permute.xlu1 (!%p360_p10), %v2552_v2  ;;  %2454 = vset.pattern.permute.xlu0 (!%p360_p10), %v2552_v2  ;;  %v411_v3 = vld [vmem:[%s3314_s1] sm:$0xff] (!%p360_p10)  ;;  %v422_v4 = vld [vmem:[%s3319_s6 + $0x18] sm:$0xff] (!%p360_p10)  ;;  %v420_v5 = vld [vmem:[%s3319_s6 + $0x8] sm:$0xff] (!%p360_p10)  ;;  %vm492_vm1 = vcmask (!%p360_p10), 1042432  }
  0x16   : > { %s2686_s16 = scalar_select %p281_p11, %s2530_s19, %s283_s14  }
  0x17   : > { %439 = vperm.xlu1 (!%p360_p10), %2455, %v421_v0   ;;  %429 = vperm.xlu0 (!%p360_p10), %2454, %v419_v1   ;;  %v424_v6 = vld [vmem:[%s3319_s6 + $0x28] sm:$0xff] (!%p360_p10)  ;;  %v423_v7 = vld [vmem:[%s3319_s6 + $0x20] sm:$0xff] (!%p360_p10)  ;;  %v413_v10 = vld [vmem:[%s3314_s1 + $0x10] sm:$0xff] (!%p360_p10)  ;;  %vm665_vm2 = vcmask (!%p360_p10), 523264   ;;  %s1976_s19 = sshll.u32 (!%p360_p10), %s2538_s21, 6  ;;  %s2553_s15 = smov (!%p360_p10), [#allocation2]  }
  0x18   : > { %3339 = sst [smem:[#allocation11_spill]] %s2686_s16  ;;  %2095 = vmatprep.mubr.msk.f32.mxu0 (!%p360_p10), %vm467_vm0, %v411_v3  ;;  %v412_v9 = vld [vmem:[%s3314_s1 + $0x8] sm:$0xff] (!%p360_p10)  ;;  %v426_v11 = vld [vmem:[%s3319_s6 + $0x38] sm:$0xff] (!%p360_p10)  ;;  %v425_v12 = vld [vmem:[%s3319_s6 + $0x30] sm:$0xff] (!%p360_p10)  ;;  %s1842_s12 = sadd.s32 (!%p360_p10), %s2534_s20, %s1976_s19 }
  0x19   : > { %v414_v13 = vld [vmem:[%s3314_s1 + $0x18] sm:$0xff] (!%p360_p10)  ;;  %v415_v14 = vld [vmem:[%s3314_s1 + $0x20] sm:$0xff] (!%p360_p10)  ;;  %v618_v15 = vld [vmem:[%s3320_s7 + $0x8] sm:$0xff] (!%p360_p10)  ;;  %s2460_s25 = sshll.u32 (!%p360_p10), %s2553_s15, 4  ;;  %s2461_s25 = int_to_ptr.vmem [resolvable:$false] %s2460_s25 }
  0x1a   : > { %v617_v16 = vld [vmem:[%s3320_s7] sm:$0xff] (!%p360_p10)  ;;  %v416_v17 = vld [vmem:[%s3314_s1 + $0x28] sm:$0xff] (!%p360_p10)  ;;  %v417_v18 = vld [vmem:[%s3314_s1 + $0x30] sm:$0xff] (!%p360_p10) }
  0x1b   : > { %444 = vperm.xlu1 (!%p360_p10), %2455, %v422_v4   ;;  %434 = vperm.xlu0 (!%p360_p10), %2454, %v420_v5   ;;  %v620_v19 = vld [vmem:[%s3320_s7 + $0x18] sm:$0xff] (!%p360_p10)  ;;  %v619_v20 = vld [vmem:[%s3320_s7 + $0x10] sm:$0xff] (!%p360_p10)  ;;  %v622_v22 = vld [vmem:[%s3320_s7 + $0x28] sm:$0xff] (!%p360_p10) }
  0x1c   : > { %s403_s29 = scalar_select %p402_p12, %s2538_s21, 1  ;;  %v418_v21 = vld [vmem:[%s3314_s1 + $0x38] sm:$0xff]  ;;  %v621_v23 = vld [vmem:[%s3320_s7 + $0x20] sm:$0xff]  ;;  %v623_v25 = vld [vmem:[%s3320_s7 + $0x30] sm:$0xff] }
  0x1d   : > { %s405_s26 = scalar_select %p404_p13, %s2534_s20, 1  ;;  %v624_v24 = vld [vmem:[%s3320_s7 + $0x38] sm:$0xff]  ;;  %v812_v26 = vld [vmem:[%s3321_s8 + $0x8] sm:$0xff]  ;;  %v811_v27 = vld [vmem:[%s3321_s8] sm:$0xff] }
  0x1e   : > { %s1932_s28 = sshll.u32 %s403_s29, 1  ;;  %v814_v28 = vld [vmem:[%s3321_s8 + $0x18] sm:$0xff]  ;;  %v813_v29 = vld [vmem:[%s3321_s8 + $0x10] sm:$0xff]  ;;  %v816_v30 = vld [vmem:[%s3321_s8 + $0x28] sm:$0xff]  ;;  %s1977_s21 = sshll.u32 %s1842_s12, 7 }
  0x1f   : > { %s407_s23 = sadd.s32 %s1932_s28, %s405_s26  ;;  %454 = vperm.xlu1 %2455, %v424_v6   ;;  %449 = vperm.xlu0 %2454, %v423_v7   ;;  %v815_v31 = vld [vmem:[%s3321_s8 + $0x20] sm:$0xff]  ;;  %v818_v32 = vld [vmem:[%s3321_s8 + $0x38] sm:$0xff]  ;;  %v817_v33 = vld [vmem:[%s3321_s8 + $0x30] sm:$0xff]  ;;  %s399_s28 = sand.u32 1, %s2526_s18  }
  0x20   : > { %s1933_s16 = sshll.u32 %s407_s23, 2  ;;  %v1013_v34 = vld [vmem:[%s3322_s9 + $0x8] sm:$0xff]  ;;  %v1012_v35 = vld [vmem:[%s3322_s9] sm:$0xff]  ;;  %v1015_v36 = vld [vmem:[%s3322_s9 + $0x18] sm:$0xff]  ;;  %s1931_s23 = sshll.u32 %s399_s28, 8 }
  0x21   : > { %s409_s27 = scalar_lea.vmem %s3313_s0, %s1933_s16  ;;  %v1014_v37 = vld [vmem:[%s3322_s9 + $0x10] sm:$0xff]  ;;  %v1017_v38 = vld [vmem:[%s3322_s9 + $0x28] sm:$0xff]  ;;  %v1016_v39 = vld [vmem:[%s3322_s9 + $0x20] sm:$0xff]  ;;  %s3200_s22 = scalar_lea.vmem [#allocation2], %s1931_s23 }
  0x22   : > { %v410_v8 = vld [vmem:[%s409_s27] sm:$0x7]  ;;  %v1019_v40 = vld [vmem:[%s3322_s9 + $0x38] sm:$0xff]  ;;  %v1018_v41 = vld [vmem:[%s3322_s9 + $0x30] sm:$0xff]  ;;  %s1845_s16 = sshll.u32 %s3200_s22, 4  ;;  %s3253_s13 = scalar_lea.hbm %s3324_s11, %s1977_s21  ;;  %s3255_s16 = int_to_ptr.vmem [resolvable:$true] %s1845_s16 }
  0x23   : > { %2093 = vmatprep.subr.msk.mxu0 %vm492_vm1, %v410_v8  ;;  %464 = vperm.xlu1 %2455, %v426_v11   ;;  %v1021_v42 = vld [vmem:[%s3322_s9 + $0x48] sm:$0xff]  ;;  %v1020_v43 = vld [vmem:[%s3322_s9 + $0x40] sm:$0xff]  ;;  %v1023_v44 = vld [vmem:[%s3322_s9 + $0x58] sm:$0xff]  ;;  %s3261_s27 = scalar_lea.sflag [#allocation3], %s399_s28  ;;  %s2456_s14 = scalar_lea.vmem %s3255_s16, 4096 }
  0x24   : > { %2094 = vmatpush3.msk.msra.mxu0 %vm492_vm1, %v410_v8  ;;  %459 = vperm.xlu0 %2454, %v425_v12   ;;  %v1022_v45 = vld [vmem:[%s3322_s9 + $0x50] sm:$0xff]  ;;  %v1025_v46 = vld [vmem:[%s3322_s9 + $0x68] sm:$0xff]  ;;  %v1024_v47 = vld [vmem:[%s3322_s9 + $0x60] sm:$0xff]  ;;  %p2457_p0 = scmp.ne.s32.totalorder %s3255_s16, %s2456_s14  ;;  %s2462_s29 = scalar_lea.vmem %s2461_s25, 8192 }
  0x25   : > { %2096 = vmatmul.mubr.msk.f32.vlgmr.msra.gmra.mrb[0].mxu0 %vm467_vm0, %v412_v9  ;;  %v1027_v48 = vld [vmem:[%s3322_s9 + $0x78] sm:$0xff]  ;;  %v1026_v49 = vld [vmem:[%s3322_s9 + $0x70] sm:$0xff]  ;;  %v1350_v50 = vld [vmem:[%s3323_s10 + $0x8] sm:$0xff]  ;;  %p2463_p4 = scmp.lt.s32.totalorder %s3255_s16, %s2461_s25  ;;  %p2464_p5 = scmp.lt.s32.totalorder %s2462_s29, %s2456_s14 }
  0x26   : > { %2098 = vmatprep.mubr.msk.f32.mxu0 %vm467_vm0, %v413_v10  ;;  %v1349_v51 = vld [vmem:[%s3323_s10] sm:$0xff]  ;;  %v1352_v52 = vld [vmem:[%s3323_s10 + $0x18] sm:$0xff]  ;;  %v1351_v53 = vld [vmem:[%s3323_s10 + $0x10] sm:$0xff]  ;;  %p2458_p1 = pnand %p2457_p0, %p2668_p3 }
  0x27   : > { %632 = vperm.xlu1 %2455, %v618_v15   ;;  %v1354_v54 = vld [vmem:[%s3323_s10 + $0x28] sm:$0xff]  ;;  %v1353_v55 = vld [vmem:[%s3323_s10 + $0x20] sm:$0xff]  ;;  %v1356_v56 = vld [vmem:[%s3323_s10 + $0x38] sm:$0xff]  ;;  %p2465_p6 = por %p2464_p5, %p2463_p4 }
  0x28   : > { %627 = vperm.xlu0 %2454, %v617_v16   ;;  %v1355_v57 = vld [vmem:[%s3323_s10 + $0x30] sm:$0xff]  ;;  %v1358_v58 = vld [vmem:[%s3323_s10 + $0x48] sm:$0xff]  ;;  %v1357_v59 = vld [vmem:[%s3323_s10 + $0x40] sm:$0xff]  ;;  %p2459_p2 = pneg %p2458_p1 }
  0x29   : > { %2099 = vmatmul.mubr.msk.f32.gmra.mrb[2].mxu0 %vm467_vm0, %v414_v13  ;;  %v1360_v60 = vld [vmem:[%s3323_s10 + $0x58] sm:$0xff]  ;;  %v1359_v61 = vld [vmem:[%s3323_s10 + $0x50] sm:$0xff]  ;;  %v1362_v62 = vld [vmem:[%s3323_s10 + $0x68] sm:$0xff] }
  0x2a   : > { %2101 = vmatprep.mubr.msk.f32.mxu0 %vm467_vm0, %v415_v14  ;;  %v1361_v63 = vld [vmem:[%s3323_s10 + $0x60] sm:$0xff]  ;;  %v1364_v0 = vld [vmem:[%s3323_s10 + $0x78] sm:$0xff]  ;;  %v1363_v1 = vld [vmem:[%s3323_s10 + $0x70] sm:$0xff]  ;;  %p2466_p7 = pnand %p2465_p6, %p2459_p2 }
  0x2b   : > { %642 = vperm.xlu1 %2455, %v620_v19   ;;  %v1366_v2 = vld [vmem:[%s3323_s10 + $0x88] sm:$0xff]  ;;  %v1365_v3 = vld [vmem:[%s3323_s10 + $0x80] sm:$0xff]  ;;  %v1368_v4 = vld [vmem:[%s3323_s10 + $0x98] sm:$0xff] }
  0x2c   : > { %637 = vperm.xlu0 %2454, %v619_v20   ;;  %v1367_v5 = vld [vmem:[%s3323_s10 + $0x90] sm:$0xff]  ;;  %v609_v6 = vld [vmem:[%s3315_s2] sm:$0xff]  ;;  %v1370_v7 = vld [vmem:[%s3323_s10 + $0xa8] sm:$0xff] }
  0x2d   : > { %2102 = vmatmul.mubr.msk.f32.gmra.mrb[4].mxu0 %vm467_vm0, %v416_v17  ;;  %2123 = vmatprep.mubr.msk.f32.mxu1 %vm665_vm2, %v609_v6  ;;  %v1369_v8 = vld [vmem:[%s3323_s10 + $0xa0] sm:$0xff]  ;;  %v1372_v9 = vld [vmem:[%s3323_s10 + $0xb8] sm:$0xff]  ;;  %v1371_v10 = vld [vmem:[%s3323_s10 + $0xb0] sm:$0xff] }
  0x2e   : > { %2104 = vmatprep.mubr.msk.f32.mxu0 %vm467_vm0, %v417_v18  ;;  %v1374_v11 = vld [vmem:[%s3323_s10 + $0xc8] sm:$0xff]  ;;  %v1373_v12 = vld [vmem:[%s3323_s10 + $0xc0] sm:$0xff]  ;;  %v1376_v13 = vld [vmem:[%s3323_s10 + $0xd8] sm:$0xff] }
  0x2f   : > { %652 = vperm.xlu1 %2455, %v622_v22   ;;  %v1375_v14 = vld [vmem:[%s3323_s10 + $0xd0] sm:$0xff]  ;;  %v1378_v15 = vld [vmem:[%s3323_s10 + $0xe8] sm:$0xff]  ;;  %v1377_v16 = vld [vmem:[%s3323_s10 + $0xe0] sm:$0xff] }
  0x30   : > { %647 = vperm.xlu0 %2454, %v621_v23   ;;  %v1380_v17 = vld [vmem:[%s3323_s10 + $0xf8] sm:$0xff]  ;;  %v1379_v18 = vld [vmem:[%s3323_s10 + $0xf0] sm:$0xff] }
  0x31   : > { %2105 = vmatmul.mubr.msk.f32.gmra.mrb[6].mxu0 %vm467_vm0, %v418_v21 }
  0x33   : > { %662 = vperm.xlu1 %2455, %v624_v24  }
  0x34   : > { %657 = vperm.xlu0 %2454, %v623_v25  }
  0x37   : > { %826 = vperm.xlu1 %2455, %v812_v26  }
  0x38   : > { %821 = vperm.xlu0 %2454, %v811_v27  }
  0x3b   : > { %836 = vperm.xlu1 %2455, %v814_v28  }
  0x3c   : > { %831 = vperm.xlu0 %2454, %v813_v29  }
  0x3f   : > { %846 = vperm.xlu1 %2455, %v816_v30  }
  0x40   : > { %841 = vperm.xlu0 %2454, %v815_v31  }
  0x43   : > { %856 = vperm.xlu1 %2455, %v818_v32  }
  0x44   : > { %851 = vperm.xlu0 %2454, %v817_v33  }
  0x47   : > { %1035 = vperm.xlu1 %2455, %v1013_v34  }
  0x48   : > { %1030 = vperm.xlu0 %2454, %v1012_v35  }
  0x4b   : > { %1045 = vperm.xlu1 %2455, %v1015_v36  }
  0x4c   : > { %1040 = vperm.xlu0 %2454, %v1014_v37  }
  0x4f   : > { %1055 = vperm.xlu1 %2455, %v1017_v38  }
  0x50   : > { %1050 = vperm.xlu0 %2454, %v1016_v39  }
  0x53   : > { %1065 = vperm.xlu1 %2455, %v1019_v40  }
  0x54   : > { %1060 = vperm.xlu0 %2454, %v1018_v41  }
  0x57   : > { %1075 = vperm.xlu1 %2455, %v1021_v42  }
  0x58   : > { %1070 = vperm.xlu0 %2454, %v1020_v43  }
  0x5b   : > { %1085 = vperm.xlu1 %2455, %v1023_v44  }
  0x5c   : > { %1080 = vperm.xlu0 %2454, %v1022_v45  }
  0x5f   : > { %1095 = vperm.xlu1 %2455, %v1025_v46  }
  0x60   : > { %1090 = vperm.xlu0 %2454, %v1024_v47  }
  0x63   : > { %1105 = vperm.xlu1 %2455, %v1027_v48  }
  0x64   : > { %1100 = vperm.xlu0 %2454, %v1026_v49  }
  0x67   : > { %1388 = vperm.xlu1 %2455, %v1350_v50  }
  0x68   : > { %1383 = vperm.xlu0 %2454, %v1349_v51  }
  0x6b   : > { %1398 = vperm.xlu1 %2455, %v1352_v52  }
  0x6c   : > { %1393 = vperm.xlu0 %2454, %v1351_v53  }
  0x6f   : > { %1408 = vperm.xlu1 %2455, %v1354_v54  }
  0x70   : > { %1403 = vperm.xlu0 %2454, %v1353_v55   ;;  %v610_v55 = vld [vmem:[%s3315_s2 + $0x8] sm:$0xff] }
  0x73   : > { %1418 = vperm.xlu1 %2455, %v1356_v56   ;;  %v611_v56 = vld [vmem:[%s3315_s2 + $0x10] sm:$0xff] }
  0x74   : > { %1413 = vperm.xlu0 %2454, %v1355_v57   ;;  %v612_v57 = vld [vmem:[%s3315_s2 + $0x18] sm:$0xff] }
  0x77   : > { %1428 = vperm.xlu1 %2455, %v1358_v58   ;;  %v613_v58 = vld [vmem:[%s3315_s2 + $0x20] sm:$0xff] }
  0x78   : > { %1423 = vperm.xlu0 %2454, %v1357_v59   ;;  %v614_v59 = vld [vmem:[%s3315_s2 + $0x28] sm:$0xff] }
  0x7b   : > { %1438 = vperm.xlu1 %2455, %v1360_v60   ;;  %v615_v60 = vld [vmem:[%s3315_s2 + $0x30] sm:$0xff] }
  0x7c   : > { %1433 = vperm.xlu0 %2454, %v1359_v61   ;;  %v616_v61 = vld [vmem:[%s3315_s2 + $0x38] sm:$0xff] }
  0x7f   : > { %1448 = vperm.xlu1 %2455, %v1362_v62   ;;  %v803_v62 = vld [vmem:[%s3316_s3] sm:$0xff] }
  0x80   : > { %1443 = vperm.xlu0 %2454, %v1361_v63   ;;  %2151 = vmatprep.mubr.msk.f32.mxu0 %vm665_vm2, %v803_v62 }
  0x83   : > { %1458 = vperm.xlu1 %2455, %v1364_v0  }
  0x84   : > { %1453 = vperm.xlu0 %2454, %v1363_v1  }
  0x87   : > { %1468 = vperm.xlu1 %2455, %v1366_v2  }
  0x88   : > { %1463 = vperm.xlu0 %2454, %v1365_v3  }
  0x8b   : > { %1478 = vperm.xlu1 %2455, %v1368_v4  }
  0x8c   : > { %1473 = vperm.xlu0 %2454, %v1367_v5  }
  0x8f   : > { %1488 = vperm.xlu1 %2455, %v1370_v7  }
  0x90   : > { %1483 = vperm.xlu0 %2454, %v1369_v8  }
  0x93   : > { %1498 = vperm.xlu1 %2455, %v1372_v9  }
  0x94   : > { %1493 = vperm.xlu0 %2454, %v1371_v10  }
  0x96   : > { %v440_v19 = vpop.permute.xlu1 %439  ;;  %v430_v20 = vpop.permute.xlu0 %429 }
  0x97   : > { %1508 = vperm.xlu1 %2455, %v1374_v11  }
  0x98   : > { %1503 = vperm.xlu0 %2454, %v1373_v12  }
  0x9a   : > { %v445_v21 = vpop.permute.xlu1 %444  ;;  %v435_v22 = vpop.permute.xlu0 %434 }
  0x9b   : > { %1518 = vperm.xlu1 %2455, %v1376_v13  }
  0x9c   : > { %1513 = vperm.xlu0 %2454, %v1375_v14  }
  0x9e   : > { %v455_v32 = vpop.permute.xlu1 %454  ;;  %v450_v35 = vpop.permute.xlu0 %449 }
  0x9f   : > { %1528 = vperm.xlu1 %2455, %v1378_v15  }
  0xa0   : > { %1523 = vperm.xlu0 %2454, %v1377_v16  }
  0xa2   : > { %v465_v44 = vpop.permute.xlu1 %464 }
  0xa3   : > { %1538 = vperm.xlu1 %2455, %v1380_v17   ;;  %v460_v47 = vpop.permute.xlu0 %459 }
  0xa4   : > { %1533 = vperm.xlu0 %2454, %v1379_v18  }
  0xa6   : > { %v633_v63 = vpop.permute.xlu1 %632 }
  0xa7   : > { %v628_v0 = vpop.permute.xlu0 %627 }
  0xaa   : > { %v643_v1 = vpop.permute.xlu1 %642 }
  0xab   : > { %v638_v3 = vpop.permute.xlu0 %637 }
  0xae   : > { %v653_v12 = vpop.permute.xlu1 %652 }
  0xaf   : > { %v648_v15 = vpop.permute.xlu0 %647 }
  0xf8   : > { %v2097_v23 = vpop.f32.mrb[0].mxu0 }
  0xf9   : > { %v568_v24 = vadd.f32 %v2097_v23, %v435_v22  ;;  %v562_v25 = vpop.f32.mrb[1].mxu0 }
  0xfa   : > { %v563_v26 = vadd.f32 %v562_v25, %v430_v20 }
  0xfb   : > { %v602_v27 = vmax.f32 %v568_v24, 0.0  ;;  %v663_v24 = vpop.permute.xlu1 %662 }
  0xfc   : > { %v601_v28 = vmax.f32 %v563_v26, 0.0  ;;  %v2100_v29 = vpop.f32.mrb[2].mxu0 }
  0xfd   : > { %v578_v30 = vadd.f32 %v2100_v29, %v445_v21  ;;  %v572_v31 = vpop.f32.mrb[3].mxu0 }
  0xfe   : > { %v573_v33 = vadd.f32 %v572_v31, %v440_v19  ;;  %v2283_v34 = vpack.c.bf16 %v602_v27, %v601_v28  ;;  %v658_v27 = vpop.permute.xlu0 %657 }
  0xff   : > { %v604_v36 = vmax.f32 %v578_v30, 0.0 }
 0x100   : > { %v603_v37 = vmax.f32 %v573_v33, 0.0  ;;  %v2103_v38 = vpop.f32.mrb[4].mxu0  ;;  %2284 = vmatprep.subr.bf16.mxu1 %v2283_v34 }
 0x101   : > { %v588_v39 = vadd.f32 %v2103_v38, %v455_v32  ;;  %v582_v40 = vpop.f32.mrb[5].mxu0  ;;  %2286 = vmatpush3.bf16.msra.mxu1 %v2283_v34  ;;  %v807_v38 = vld [vmem:[%s3316_s3 + $0x20] sm:$0xff] }
 0x102   : > { %v2287_v41 = vpack.c.bf16 %v604_v36, %v603_v37  ;;  %v583_v42 = vadd.f32 %v582_v40, %v450_v35  ;;  %v804_v35 = vld [vmem:[%s3316_s3 + $0x8] sm:$0xff]  ;;  %v805_v36 = vld [vmem:[%s3316_s3 + $0x10] sm:$0xff]  ;;  %v806_v37 = vld [vmem:[%s3316_s3 + $0x18] sm:$0xff] }
 0x103   : > { %v606_v43 = vmax.f32 %v588_v39, 0.0  ;;  %v808_v39 = vld [vmem:[%s3316_s3 + $0x28] sm:$0xff]  ;;  %v809_v40 = vld [vmem:[%s3316_s3 + $0x30] sm:$0xff] }
 0x104   : > { %v605_v45 = vmax.f32 %v583_v42, 0.0  ;;  %v2106_v46 = vpop.f32.mrb[6].mxu0  ;;  %2288 = vmatprep.subr.bf16.mxu1 %v2287_v41  ;;  %v996_v42 = vld [vmem:[%s3317_s4] sm:$0xff] }
 0x105   : > { %v598_v48 = vadd.f32 %v2106_v46, %v465_v44  ;;  %v592_v49 = vpop.f32.mrb[7].mxu0  ;;  %2290 = vmatpush3.bf16.msra.mxu1 %v2287_v41  ;;  %v810_v41 = vld [vmem:[%s3316_s3 + $0x38] sm:$0xff]  ;;  %v822_v44 = vpop.permute.xlu0 %821 }
 0x106   : > { %v2291_v50 = vpack.c.bf16 %v606_v43, %v605_v45  ;;  %v593_v51 = vadd.f32 %v592_v49, %v460_v47  ;;  %v827_v43 = vpop.permute.xlu1 %826 }
 0x107   : > { %v608_v52 = vmax.f32 %v598_v48, 0.0 }
 0x108   : > { %v607_v53 = vmax.f32 %v593_v51, 0.0  ;;  %2292 = vmatprep.subr.bf16.mxu1 %v2291_v50 }
 0x109   : > { %2294 = vmatpush3.bf16.msra.mxu1 %v2291_v50  ;;  %v832_v47 = vpop.permute.xlu0 %831 }
 0x10a   : > { %v2295_v54 = vpack.c.bf16 %v608_v52, %v607_v53  ;;  %v837_v45 = vpop.permute.xlu1 %836 }
 0x10c   : > { %2296 = vmatprep.subr.bf16.mxu1 %v2295_v54 }
 0x10d   : > { %2298 = vmatpush3.bf16.msra.mxu1 %v2295_v54 }
 0x110   : > { %2124 = vmatmul.mubr.msk.f32.vlgmr.msra.gmra.mrb[0].mxu1 %vm665_vm2, %v610_v55 }
 0x111   : > { %2126 = vmatprep.mubr.msk.f32.mxu1 %vm665_vm2, %v611_v56  ;;  %v847_v56 = vpop.permute.xlu1 %846 }
 0x114   : > { %2127 = vmatmul.mubr.msk.f32.gmra.mrb[2].mxu1 %vm665_vm2, %v612_v57 }
 0x115   : > { %2129 = vmatprep.mubr.msk.f32.mxu1 %vm665_vm2, %v613_v58 }
 0x118   : > { %2130 = vmatmul.mubr.msk.f32.gmra.mrb[4].mxu1 %vm665_vm2, %v614_v59  ;;  %v842_v59 = vpop.permute.xlu0 %841 }
 0x119   : > { %2132 = vmatprep.mubr.msk.f32.mxu1 %vm665_vm2, %v615_v60 }
 0x11c   : > { %2133 = vmatmul.mubr.msk.f32.gmra.mrb[6].mxu1 %vm665_vm2, %v616_v61 }
 0x11d   : > { %2179 = vmatprep.mubr.msk.f32.mxu1 %vm665_vm2, %v996_v42 }
 0x1e3   : > { %v2125_v2 = vpop.f32.mrb[0].mxu1 }
 0x1e4   : > { %v762_v4 = vadd.f32 %v2125_v2, %v633_v63  ;;  %v756_v5 = vpop.f32.mrb[1].mxu1 }
 0x1e5   : > { %v757_v6 = vadd.f32 %v756_v5, %v628_v0 }
 0x1e6   : > { %v796_v7 = vmax.f32 %v762_v4, 0.0  ;;  %v857_v4 = vpop.permute.xlu1 %856 }
 0x1e7   : > { %v795_v8 = vmax.f32 %v757_v6, 0.0  ;;  %v2128_v9 = vpop.f32.mrb[2].mxu1 }
 0x1e8   : > { %v772_v10 = vadd.f32 %v2128_v9, %v643_v1  ;;  %v766_v11 = vpop.f32.mrb[3].mxu1 }
 0x1e9   : > { %v2299_v13 = vpack.c.bf16 %v796_v7, %v795_v8  ;;  %v767_v14 = vadd.f32 %v766_v11, %v638_v3  ;;  %v852_v7 = vpop.permute.xlu0 %851 }
 0x1ea   : > { %v798_v16 = vmax.f32 %v772_v10, 0.0 }
 0x1eb   : > { %v797_v17 = vmax.f32 %v767_v14, 0.0  ;;  %v2131_v18 = vpop.f32.mrb[4].mxu1  ;;  %2300 = vmatprep.subr.bf16.mxu0 %v2299_v13 }
 0x1ec   : > { %v782_v19 = vadd.f32 %v2131_v18, %v653_v12  ;;  %v776_v20 = vpop.f32.mrb[5].mxu1  ;;  %2302 = vmatpush3.bf16.msra.mxu0 %v2299_v13  ;;  %v1000_v18 = vld [vmem:[%s3317_s4 + $0x20] sm:$0xff] }
 0x1ed   : > { %v2303_v21 = vpack.c.bf16 %v798_v16, %v797_v17  ;;  %v777_v22 = vadd.f32 %v776_v20, %v648_v15  ;;  %v997_v15 = vld [vmem:[%s3317_s4 + $0x8] sm:$0xff]  ;;  %v998_v16 = vld [vmem:[%s3317_s4 + $0x10] sm:$0xff]  ;;  %v999_v17 = vld [vmem:[%s3317_s4 + $0x18] sm:$0xff] }
 0x1ee   : > { %v800_v23 = vmax.f32 %v782_v19, 0.0  ;;  %v1001_v19 = vld [vmem:[%s3317_s4 + $0x28] sm:$0xff]  ;;  %v1002_v20 = vld [vmem:[%s3317_s4 + $0x30] sm:$0xff] }
 0x1ef   : > { %v799_v25 = vmax.f32 %v777_v22, 0.0  ;;  %v2134_v26 = vpop.f32.mrb[6].mxu1  ;;  %2304 = vmatprep.subr.bf16.mxu0 %v2303_v21  ;;  %v1004_v22 = vld [vmem:[%s3317_s4 + $0x40] sm:$0xff] }
 0x1f0   : > { %v792_v28 = vadd.f32 %v2134_v26, %v663_v24  ;;  %v786_v29 = vpop.f32.mrb[7].mxu1  ;;  %2306 = vmatpush3.bf16.msra.mxu0 %v2303_v21  ;;  %v1003_v21 = vld [vmem:[%s3317_s4 + $0x38] sm:$0xff]  ;;  %v1006_v24 = vld [vmem:[%s3317_s4 + $0x50] sm:$0xff]  ;;  %v1008_v26 = vld [vmem:[%s3317_s4 + $0x60] sm:$0xff] }
 0x1f1   : > { %v2307_v30 = vpack.c.bf16 %v800_v23, %v799_v25  ;;  %v787_v31 = vadd.f32 %v786_v29, %v658_v27  ;;  %v1005_v23 = vld [vmem:[%s3317_s4 + $0x48] sm:$0xff]  ;;  %v1007_v25 = vld [vmem:[%s3317_s4 + $0x58] sm:$0xff] }
 0x1f2   : > { %v802_v32 = vmax.f32 %v792_v28, 0.0  ;;  %v1009_v27 = vld [vmem:[%s3317_s4 + $0x68] sm:$0xff]  ;;  %v1010_v28 = vld [vmem:[%s3317_s4 + $0x70] sm:$0xff]  ;;  %v1011_v29 = vld [vmem:[%s3317_s4 + $0x78] sm:$0xff] }
 0x1f3   : > { %v801_v33 = vmax.f32 %v787_v31, 0.0  ;;  %2308 = vmatprep.subr.bf16.mxu0 %v2307_v30  ;;  %v1337_v31 = vld [vmem:[%s3318_s5 + $0xa0] sm:$0xff] }
 0x1f4   : > { %2310 = vmatpush3.bf16.msra.mxu0 %v2307_v30  ;;  %v1317_v30 = vld [vmem:[%s3318_s5] sm:$0xff] }
 0x1f5   : > { %v2311_v34 = vpack.c.bf16 %v802_v32, %v801_v33  ;;  %v1036_v32 = vpop.permute.xlu1 %1035  ;;  %v1031_v33 = vpop.permute.xlu0 %1030 }
 0x1f7   : > { %2312 = vmatprep.subr.bf16.mxu0 %v2311_v34 }
 0x1f8   : > { %2314 = vmatpush3.bf16.msra.mxu0 %v2311_v34 }
 0x1f9   : > { %v1046_v34 = vpop.permute.xlu1 %1045 }
 0x1fb   : > { %2152 = vmatmul.mubr.msk.f32.vlgmr.msra.gmra.mrb[8].mxu0 %vm665_vm2, %v804_v35  ;;  %v1041_v35 = vpop.permute.xlu0 %1040 }
 0x1fc   : > { %2154 = vmatprep.mubr.msk.f32.mxu0 %vm665_vm2, %v805_v36 }
 0x1fd   : > { %v1056_v36 = vpop.permute.xlu1 %1055 }
 0x1ff   : > { %2155 = vmatmul.mubr.msk.f32.gmra.mrb[10].mxu0 %vm665_vm2, %v806_v37  ;;  %v1051_v37 = vpop.permute.xlu0 %1050 }
 0x200   : > { %2157 = vmatprep.mubr.msk.f32.mxu0 %vm665_vm2, %v807_v38 }
 0x203   : > { %2158 = vmatmul.mubr.msk.f32.gmra.mrb[12].mxu0 %vm665_vm2, %v808_v39 }
 0x204   : > { %2160 = vmatprep.mubr.msk.f32.mxu0 %vm665_vm2, %v809_v40 }
 0x207   : > { %2161 = vmatmul.mubr.msk.f32.gmra.mrb[14].mxu0 %vm665_vm2, %v810_v41 }
 0x208   : > { %2235 = vmatprep.mubr.f32.mxu0 %v1317_v30 }
 0x2ce   : > { %v2153_v46 = vpop.f32.mrb[8].mxu0 }
 0x2cf   : > { %v955_v48 = vadd.f32 %v2153_v46, %v827_v43  ;;  %v949_v49 = vpop.f32.mrb[9].mxu0  ;;  %v1066_v43 = vpop.permute.xlu1 %1065 }
 0x2d0   : > { %v950_v50 = vadd.f32 %v949_v49, %v822_v44  ;;  %v1061_v46 = vpop.permute.xlu0 %1060 }
 0x2d1   : > { %v989_v51 = vmax.f32 %v955_v48, 0.0 }
 0x2d2   : > { %v988_v52 = vmax.f32 %v950_v50, 0.0  ;;  %v2156_v53 = vpop.f32.mrb[10].mxu0 }
 0x2d3   : > { %v965_v54 = vadd.f32 %v2156_v53, %v837_v45  ;;  %v959_v55 = vpop.f32.mrb[11].mxu0 }
 0x2d4   : > { %v2315_v57 = vpack.c.bf16 %v989_v51, %v988_v52  ;;  %v960_v58 = vadd.f32 %v959_v55, %v832_v47 }
 0x2d5   : > { %v991_v60 = vmax.f32 %v965_v54, 0.0 }
 0x2d6   : > { %v990_v61 = vmax.f32 %v960_v58, 0.0  ;;  %v2159_v62 = vpop.f32.mrb[12].mxu0  ;;  %2316 = vmatprep.subr.bf16.mxu1 %v2315_v57 }
 0x2d7   : > { %v975_v63 = vadd.f32 %v2159_v62, %v847_v56  ;;  %v969_v0 = vpop.f32.mrb[13].mxu0  ;;  %2318 = vmatpush3.bf16.msra.mxu1 %v2315_v57  ;;  %v1076_v56 = vpop.permute.xlu1 %1075 }
 0x2d8   : > { %v2319_v1 = vpack.c.bf16 %v991_v60, %v990_v61  ;;  %v970_v2 = vadd.f32 %v969_v0, %v842_v59  ;;  %v1071_v59 = vpop.permute.xlu0 %1070 }
 0x2d9   : > { %v993_v3 = vmax.f32 %v975_v63, 0.0 }
 0x2da   : > { %v992_v5 = vmax.f32 %v970_v2, 0.0  ;;  %v2162_v6 = vpop.f32.mrb[14].mxu0  ;;  %2320 = vmatprep.subr.bf16.mxu1 %v2319_v1 }
 0x2db   : > { %v985_v8 = vadd.f32 %v2162_v6, %v857_v4  ;;  %v979_v9 = vpop.f32.mrb[15].mxu0  ;;  %2322 = vmatpush3.bf16.msra.mxu1 %v2319_v1  ;;  %v1086_v4 = vpop.permute.xlu1 %1085 }
 0x2dc   : > { %v2323_v10 = vpack.c.bf16 %v993_v3, %v992_v5  ;;  %v980_v11 = vadd.f32 %v979_v9, %v852_v7  ;;  %v1081_v7 = vpop.permute.xlu0 %1080 }
 0x2dd   : > { %v995_v12 = vmax.f32 %v985_v8, 0.0 }
 0x2de   : > { %v994_v13 = vmax.f32 %v980_v11, 0.0  ;;  %2324 = vmatprep.subr.bf16.mxu1 %v2323_v10 }
 0x2df   : > { %2326 = vmatpush3.bf16.msra.mxu1 %v2323_v10 }
 0x2e0   : > { %v2327_v14 = vpack.c.bf16 %v995_v12, %v994_v13 }
 0x2e2   : > { %2328 = vmatprep.subr.bf16.mxu1 %v2327_v14 }
 0x2e3   : > { %2330 = vmatpush3.bf16.msra.mxu1 %v2327_v14 }
 0x2e6   : > { %2180 = vmatmul.mubr.msk.f32.vlgmr.msra.gmra.mrb[8].mxu1 %vm665_vm2, %v997_v15 }
 0x2e7   : > { %2182 = vmatprep.mubr.msk.f32.mxu1 %vm665_vm2, %v998_v16 }
 0x2ea   : > { %2183 = vmatmul.mubr.msk.f32.gmra.mrb[10].mxu1 %vm665_vm2, %v999_v17  ;;  %v1096_v17 = vpop.permute.xlu1 %1095 }
 0x2eb   : > { %2185 = vmatprep.mubr.msk.f32.mxu1 %vm665_vm2, %v1000_v18 }
 0x2ee   : > { %2186 = vmatmul.mubr.msk.f32.gmra.mrb[12].mxu1 %vm665_vm2, %v1001_v19 }
 0x2ef   : > { %2188 = vmatprep.mubr.msk.f32.mxu1 %vm665_vm2, %v1002_v20  ;;  %v1091_v20 = vpop.permute.xlu0 %1090 }
 0x2f2   : > { %2189 = vmatmul.mubr.msk.f32.gmra.mrb[14].mxu1 %vm665_vm2, %v1003_v21 }
 0x2f3   : > { %2191 = vmatprep.mubr.msk.f32.mxu1 %vm665_vm2, %v1004_v22 }
 0x2f6   : > { %2192 = vmatmul.mubr.msk.f32.gmra.mrb[16].mxu1 %vm665_vm2, %v1005_v23 }
 0x2f7   : > { %2194 = vmatprep.mubr.msk.f32.mxu1 %vm665_vm2, %v1006_v24 }
 0x2fa   : > { %2195 = vmatmul.mubr.msk.f32.gmra.mrb[18].mxu1 %vm665_vm2, %v1007_v25 }
 0x2fb   : > { %2197 = vmatprep.mubr.msk.f32.mxu1 %vm665_vm2, %v1008_v26 }
 0x2fe   : > { %2198 = vmatmul.mubr.msk.f32.gmra.mrb[20].mxu1 %vm665_vm2, %v1009_v27 }
 0x2ff   : > { %2200 = vmatprep.mubr.msk.f32.mxu1 %vm665_vm2, %v1010_v28 }
 0x302   : > { %2201 = vmatmul.mubr.msk.f32.gmra.mrb[22].mxu1 %vm665_vm2, %v1011_v29  ;;  %v1106_v29 = vpop.permute.xlu1 %1105 }
 0x303   : > { %2265 = vmatprep.mubr.f32.mxu1 %v1337_v31 }
 0x3b9   : > { %v2181_v38 = vpop.f32.mrb[8].mxu1 }
 0x3ba   : > { %v1228_v39 = vadd.f32 %v2181_v38, %v1036_v32  ;;  %v1222_v40 = vpop.f32.mrb[9].mxu1  ;;  %v1101_v32 = vpop.permute.xlu0 %1100 }
 0x3bb   : > { %v1223_v41 = vadd.f32 %v1222_v40, %v1031_v33  ;;  %v1318_v40 = vld [vmem:[%s3318_s5 + $0x8] sm:$0xff] }
 0x3bc   : > { %v1302_v42 = vmax.f32 %v1228_v39, 0.0 }
 0x3bd   : > { %v1301_v44 = vmax.f32 %v1223_v41, 0.0  ;;  %v2184_v45 = vpop.f32.mrb[10].mxu1  ;;  %v1338_v41 = vld [vmem:[%s3318_s5 + $0xa8] sm:$0xff] }
 0x3be   : > { %v1238_v47 = vadd.f32 %v2184_v45, %v1046_v34  ;;  %v1232_v48 = vpop.f32.mrb[11].mxu1  ;;  %v1340_v45 = vld [vmem:[%s3318_s5 + $0xb8] sm:$0xff] }
 0x3bf   : > { %v2331_v49 = vpack.c.bf16 %v1302_v42, %v1301_v44  ;;  %v1233_v50 = vadd.f32 %v1232_v48, %v1041_v35  ;;  %v1319_v42 = vld [vmem:[%s3318_s5 + $0x10] sm:$0xff]  ;;  %v1320_v44 = vld [vmem:[%s3318_s5 + $0x18] sm:$0xff]  ;;  %v1322_v48 = vld [vmem:[%s3318_s5 + $0x28] sm:$0xff] }
 0x3c0   : > { %v1304_v51 = vmax.f32 %v1238_v47, 0.0  ;;  %v1341_v47 = vld [vmem:[%s3318_s5 + $0xc0] sm:$0xff] }
 0x3c1   : > { %v1303_v52 = vmax.f32 %v1233_v50, 0.0  ;;  %v2187_v53 = vpop.f32.mrb[12].mxu1  ;;  %2332 = vmatprep.subr.bf16.mxu0 %v2331_v49  ;;  %2363 = vmatprep.subr.bf16.mxu1 %v2331_v49  ;;  %v1323_v50 = vld [vmem:[%s3318_s5 + $0x30] sm:$0xff] }
 0x3c2   : > { %v1248_v54 = vadd.f32 %v2187_v53, %v1056_v36  ;;  %v1242_v55 = vpop.f32.mrb[13].mxu1  ;;  %2334 = vmatpush3.bf16.msra.mxu0 %v2331_v49  ;;  %2371 = vmatpush3.bf16.msra.mxu1 %v2331_v49  ;;  %v1342_v49 = vld [vmem:[%s3318_s5 + $0xc8] sm:$0xff]  ;;  %v1344_v53 = vld [vmem:[%s3318_s5 + $0xd8] sm:$0xff] }
 0x3c3   : > { %v2335_v57 = vpack.c.bf16 %v1304_v51, %v1303_v52  ;;  %v1243_v58 = vadd.f32 %v1242_v55, %v1051_v37  ;;  %v1343_v51 = vld [vmem:[%s3318_s5 + $0xd0] sm:$0xff]  ;;  %v1324_v52 = vld [vmem:[%s3318_s5 + $0x38] sm:$0xff]  ;;  %v1345_v55 = vld [vmem:[%s3318_s5 + $0xe0] sm:$0xff] }
 0x3c4   : > { %v1306_v60 = vmax.f32 %v1248_v54, 0.0  ;;  %v1325_v54 = vld [vmem:[%s3318_s5 + $0x40] sm:$0xff] }
 0x3c5   : > { %v1305_v61 = vmax.f32 %v1243_v58, 0.0  ;;  %v2190_v62 = vpop.f32.mrb[14].mxu1  ;;  %2336 = vmatprep.subr.bf16.mxu0 %v2335_v57  ;;  %2364 = vmatprep.subr.bf16.mxu1 %v2335_v57  ;;  %v1327_v58 = vld [vmem:[%s3318_s5 + $0x50] sm:$0xff] }
 0x3c6   : > { %v1258_v63 = vadd.f32 %v2190_v62, %v1066_v43  ;;  %v1252_v0 = vpop.f32.mrb[15].mxu1  ;;  %2338 = vmatpush3.bf16.msra.mxu0 %v2335_v57  ;;  %2372 = vmatpush3.bf16.msra.mxu1 %v2335_v57  ;;  %v1339_v43 = vld [vmem:[%s3318_s5 + $0xb0] sm:$0xff]  ;;  %v1346_v57 = vld [vmem:[%s3318_s5 + $0xe8] sm:$0xff]  ;;  %v1329_v62 = vld [vmem:[%s3318_s5 + $0x60] sm:$0xff] }
 0x3c7   : > { %v2339_v1 = vpack.c.bf16 %v1306_v60, %v1305_v61  ;;  %v1253_v2 = vadd.f32 %v1252_v0, %v1061_v46  ;;  %v1321_v46 = vld [vmem:[%s3318_s5 + $0x20] sm:$0xff]  ;;  %v1328_v60 = vld [vmem:[%s3318_s5 + $0x58] sm:$0xff]  ;;  %v1331_v0 = vld [vmem:[%s3318_s5 + $0x70] sm:$0xff] }
 0x3c8   : > { %v1308_v3 = vmax.f32 %v1258_v63, 0.0  ;;  %v1348_v61 = vld [vmem:[%s3318_s5 + $0xf8] sm:$0xff]  ;;  %v1330_v63 = vld [vmem:[%s3318_s5 + $0x68] sm:$0xff] }
 0x3c9   : > { %v1307_v5 = vmax.f32 %v1253_v2, 0.0  ;;  %v2193_v6 = vpop.f32.mrb[16].mxu1  ;;  %2340 = vmatprep.subr.bf16.mxu0 %v2339_v1  ;;  %2365 = vmatprep.subr.bf16.mxu1 %v2339_v1  ;;  %v1333_v2 = vld [vmem:[%s3318_s5 + $0x80] sm:$0xff] }
 0x3ca   : > { %v1268_v8 = vadd.f32 %v2193_v6, %v1076_v56  ;;  %v1262_v9 = vpop.f32.mrb[17].mxu1  ;;  %2342 = vmatpush3.bf16.msra.mxu0 %v2339_v1  ;;  %2373 = vmatpush3.bf16.msra.mxu1 %v2339_v1  ;;  %v1326_v56 = vld [vmem:[%s3318_s5 + $0x48] sm:$0xff]  ;;  %v1332_v1 = vld [vmem:[%s3318_s5 + $0x78] sm:$0xff]  ;;  %v1389_v6 = vpop.permute.xlu1 %1388 }
 0x3cb   : > { %v2343_v10 = vpack.c.bf16 %v1308_v3, %v1307_v5  ;;  %v1263_v11 = vadd.f32 %v1262_v9, %v1071_v59  ;;  %v1347_v59 = vld [vmem:[%s3318_s5 + $0xf0] sm:$0xff]  ;;  %v1334_v3 = vld [vmem:[%s3318_s5 + $0x88] sm:$0xff]  ;;  %v1336_v5 = vld [vmem:[%s3318_s5 + $0x98] sm:$0xff] }
 0x3cc   : > { %v1310_v12 = vmax.f32 %v1268_v8, 0.0 }
 0x3cd   : > { %v1309_v13 = vmax.f32 %v1263_v11, 0.0  ;;  %v2196_v14 = vpop.f32.mrb[18].mxu1  ;;  %2344 = vmatprep.subr.bf16.mxu0 %v2343_v10  ;;  %2366 = vmatprep.subr.bf16.mxu1 %v2343_v10 }
 0x3ce   : > { %v1278_v15 = vadd.f32 %v2196_v14, %v1086_v4  ;;  %v1272_v16 = vpop.f32.mrb[19].mxu1  ;;  %2346 = vmatpush3.bf16.msra.mxu0 %v2343_v10  ;;  %2374 = vmatpush3.bf16.msra.mxu1 %v2343_v10  ;;  %v1335_v4 = vld [vmem:[%s3318_s5 + $0x90] sm:$0xff]  ;;  %v1399_v8 = vpop.permute.xlu1 %1398 }
 0x3cf   : > { %v2347_v18 = vpack.c.bf16 %v1310_v12, %v1309_v13  ;;  %v1273_v19 = vadd.f32 %v1272_v16, %v1081_v7  ;;  %v1384_v7 = vpop.permute.xlu0 %1383 }
 0x3d0   : > { %v1312_v21 = vmax.f32 %v1278_v15, 0.0 }
 0x3d1   : > { %v1311_v22 = vmax.f32 %v1273_v19, 0.0  ;;  %v2199_v23 = vpop.f32.mrb[20].mxu1  ;;  %2348 = vmatprep.subr.bf16.mxu0 %v2347_v18  ;;  %2367 = vmatprep.subr.bf16.mxu1 %v2347_v18 }
 0x3d2   : > { %v1288_v24 = vadd.f32 %v2199_v23, %v1096_v17  ;;  %v1282_v25 = vpop.f32.mrb[21].mxu1  ;;  %2350 = vmatpush3.bf16.msra.mxu0 %v2347_v18  ;;  %2375 = vmatpush3.bf16.msra.mxu1 %v2347_v18  ;;  %v1409_v10 = vpop.permute.xlu1 %1408 }
 0x3d3   : > { %v2351_v26 = vpack.c.bf16 %v1312_v21, %v1311_v22  ;;  %v1283_v27 = vadd.f32 %v1282_v25, %v1091_v20  ;;  %v1394_v9 = vpop.permute.xlu0 %1393 }
 0x3d4   : > { %v1314_v28 = vmax.f32 %v1288_v24, 0.0 }
 0x3d5   : > { %v1313_v30 = vmax.f32 %v1283_v27, 0.0  ;;  %v2202_v31 = vpop.f32.mrb[22].mxu1  ;;  %2352 = vmatprep.subr.bf16.mxu0 %v2351_v26  ;;  %2368 = vmatprep.subr.bf16.mxu1 %v2351_v26 }
 0x3d6   : > { %v1298_v33 = vadd.f32 %v2202_v31, %v1106_v29  ;;  %v1292_v34 = vpop.f32.mrb[23].mxu1  ;;  %2354 = vmatpush3.bf16.msra.mxu0 %v2351_v26  ;;  %2376 = vmatpush3.bf16.msra.mxu1 %v2351_v26  ;;  %v3169_v12 = vpop.permute.xlu1 %1418 }
 0x3d7   : > { %v2355_v35 = vpack.c.bf16 %v1314_v28, %v1313_v30  ;;  %v1293_v36 = vadd.f32 %v1292_v34, %v1101_v32  ;;  %v3167_v11 = vpop.permute.xlu0 %1403 }
 0x3d8   : > { %v1316_v37 = vmax.f32 %v1298_v33, 0.0 }
 0x3d9   : > { %v1315_v38 = vmax.f32 %v1293_v36, 0.0  ;;  %2356 = vmatprep.subr.bf16.mxu0 %v2355_v35  ;;  %2369 = vmatprep.subr.bf16.mxu1 %v2355_v35 }
 0x3da   : > { %2358 = vmatpush3.bf16.msra.mxu0 %v2355_v35  ;;  %2377 = vmatpush3.bf16.msra.mxu1 %v2355_v35  ;;  %v3173_v14 = vpop.permute.xlu1 %1428 }
 0x3db   : > { %v2359_v39 = vpack.c.bf16 %v1316_v37, %v1315_v38  ;;  %v3171_v13 = vpop.permute.xlu0 %1413 }
 0x3dd   : > { %2360 = vmatprep.subr.bf16.mxu0 %v2359_v39  ;;  %2370 = vmatprep.subr.bf16.mxu1 %v2359_v39 }
 0x3de   : > { %2362 = vmatpush3.bf16.msra.mxu0 %v2359_v39  ;;  %2378 = vmatpush3.bf16.msra.mxu1 %v2359_v39  ;;  %v3177_v16 = vpop.permute.xlu1 %1438 }
 0x3df   : > { %v3175_v15 = vpop.permute.xlu0 %1423 }
 0x3e1   : > { %2236 = vmatmul.mubr.f32.vlgmr.msra.gmra.mrb[16].mxu0 %v1318_v40  ;;  %2266 = vmatmul.mubr.f32.vlgmr.msra.gmra.mrb[24].mxu1 %v1338_v41 }
 0x3e2   : > { %2238 = vmatprep.mubr.f32.mxu0 %v1319_v42  ;;  %2268 = vmatprep.mubr.f32.mxu1 %v1339_v43  ;;  %v3181_v18 = vpop.permute.xlu1 %1448 }
 0x3e3   : > { %v3179_v17 = vpop.permute.xlu0 %1433 }
 0x3e5   : > { %2239 = vmatmul.mubr.f32.gmra.mrb[18].mxu0 %v1320_v44  ;;  %2269 = vmatmul.mubr.f32.gmra.mrb[26].mxu1 %v1340_v45 }
 0x3e6   : > { %2241 = vmatprep.mubr.f32.mxu0 %v1321_v46  ;;  %2271 = vmatprep.mubr.f32.mxu1 %v1341_v47  ;;  %v3185_v20 = vpop.permute.xlu1 %1458 }
 0x3e7   : > { %v3183_v19 = vpop.permute.xlu0 %1443 }
 0x3e9   : > { %2242 = vmatmul.mubr.f32.gmra.mrb[20].mxu0 %v1322_v48  ;;  %2272 = vmatmul.mubr.f32.gmra.mrb[28].mxu1 %v1342_v49 }
 0x3ea   : > { %2244 = vmatprep.mubr.f32.mxu0 %v1323_v50  ;;  %2274 = vmatprep.mubr.f32.mxu1 %v1343_v51  ;;  %v3189_v22 = vpop.permute.xlu1 %1468 }
 0x3eb   : > { %v3187_v21 = vpop.permute.xlu0 %1453 }
 0x3ed   : > { %2245 = vmatmul.mubr.f32.gmra.mrb[22].mxu0 %v1324_v52  ;;  %2275 = vmatmul.mubr.f32.gmra.mrb[30].mxu1 %v1344_v53 }
 0x3ee   : > { %2247 = vmatprep.mubr.f32.mxu0 %v1325_v54  ;;  %2277 = vmatprep.mubr.f32.mxu1 %v1345_v55  ;;  %v3193_v24 = vpop.permute.xlu1 %1478 }
 0x3ef   : > { %v3191_v23 = vpop.permute.xlu0 %1463 }
 0x3f1   : > { %2248 = vmatmul.mubr.f32.gmra.mrb[24].mxu0 %v1326_v56  ;;  %2278 = vmatmul.mubr.f32.gmra.mrb[32].mxu1 %v1346_v57 }
 0x3f2   : > { %2250 = vmatprep.mubr.f32.mxu0 %v1327_v58  ;;  %2280 = vmatprep.mubr.f32.mxu1 %v1347_v59  ;;  %v1489_v26 = vpop.permute.xlu1 %1488 }
 0x3f3   : > { %v3195_v25 = vpop.permute.xlu0 %1473 }
 0x3f5   : > { %2251 = vmatmul.mubr.f32.gmra.mrb[26].mxu0 %v1328_v60  ;;  %2281 = vmatmul.mubr.f32.gmra.mrb[34].mxu1 %v1348_v61 }
 0x3f6   : > { %2253 = vmatprep.mubr.f32.mxu0 %v1329_v62  ;;  %v1499_v28 = vpop.permute.xlu1 %1498 }
 0x3f7   : > { %v1484_v27 = vpop.permute.xlu0 %1483 }
 0x3f9   : > { %2254 = vmatmul.mubr.f32.gmra.mrb[28].mxu0 %v1330_v63 }
 0x3fa   : > { %2256 = vmatprep.mubr.f32.mxu0 %v1331_v0  ;;  %v1509_v30 = vpop.permute.xlu1 %1508 }
 0x3fb   : > { %v1494_v29 = vpop.permute.xlu0 %1493 }
 0x3fd   : > { %2257 = vmatmul.mubr.f32.gmra.mrb[30].mxu0 %v1332_v1 }
 0x3fe   : > { %2259 = vmatprep.mubr.f32.mxu0 %v1333_v2  ;;  %v1519_v40 = vpop.permute.xlu1 %1518 }
 0x3ff   : > { %v1504_v31 = vpop.permute.xlu0 %1503 }
 0x401   : > { %2260 = vmatmul.mubr.f32.gmra.mrb[32].mxu0 %v1334_v3 }
 0x402   : > { %2262 = vmatprep.mubr.f32.mxu0 %v1335_v4  ;;  %v1529_v2 = vpop.permute.xlu1 %1528 }
 0x403   : > { %v1514_v41 = vpop.permute.xlu0 %1513 }
 0x405   : > { %2263 = vmatmul.mubr.f32.gmra.mrb[34].mxu0 %v1336_v5 }
 0x407   : > { %v1524_v3 = vpop.permute.xlu0 %1523 }
 0x4b4   : > { %v2237_v32 = vpop.f32.mrb[16].mxu0  ;;  %v2267_v33 = vpop.f32.mrb[24].mxu1 }
 0x4b5   : > { %v1613_v34 = vadd.f32 %v2237_v32, %v1389_v6  ;;  %v1713_v35 = vadd.f32 %v2267_v33, %v1489_v26  ;;  %v1607_v36 = vpop.f32.mrb[17].mxu0  ;;  %v1707_v37 = vpop.f32.mrb[25].mxu1 }
 0x4b6   : > { %v1608_v38 = vadd.f32 %v1607_v36, %v1384_v7  ;;  %v1708_v39 = vadd.f32 %v1707_v37, %v1484_v27 }
 0x4b7   : > { %v1767_v42 = vmax.f32 %v1613_v34, 0.0  ;;  %v1787_v43 = vmax.f32 %v1713_v35, 0.0 }
 0x4b8   : > { %v1766_v44 = vmax.f32 %v1608_v38, 0.0  ;;  %v1786_v45 = vmax.f32 %v1708_v39, 0.0  ;;  %v2240_v46 = vpop.f32.mrb[18].mxu0  ;;  %v2270_v47 = vpop.f32.mrb[26].mxu1 }
 0x4b9   : > { %1799 = vst [vmem:[%s3200_s22 + $0x8] sm:$0xff] %v1767_v42  ;;  %1819 = vst [vmem:[%s3200_s22 + $0xa8] sm:$0xff] %v1787_v43  ;;  %v1623_v48 = vadd.f32 %v2240_v46, %v1399_v8  ;;  %v1723_v49 = vadd.f32 %v2270_v47, %v1499_v28  ;;  %v1617_v50 = vpop.f32.mrb[19].mxu0  ;;  %v1717_v51 = vpop.f32.mrb[27].mxu1 }
 0x4ba   : > { %1798 = vst [vmem:[%s3200_s22] sm:$0xff] %v1766_v44  ;;  %1818 = vst [vmem:[%s3200_s22 + $0xa0] sm:$0xff] %v1786_v45  ;;  %v1618_v52 = vadd.f32 %v1617_v50, %v1394_v9  ;;  %v1718_v53 = vadd.f32 %v1717_v51, %v1494_v29 }
 0x4bb   : > { %v1769_v54 = vmax.f32 %v1623_v48, 0.0  ;;  %v1789_v55 = vmax.f32 %v1723_v49, 0.0 }
 0x4bc   : > { %v1768_v56 = vmax.f32 %v1618_v52, 0.0  ;;  %v1788_v57 = vmax.f32 %v1718_v53, 0.0  ;;  %v2243_v58 = vpop.f32.mrb[20].mxu0  ;;  %v2273_v59 = vpop.f32.mrb[28].mxu1 }
 0x4bd   : > { %1801 = vst [vmem:[%s3200_s22 + $0x18] sm:$0xff] %v1769_v54  ;;  %1821 = vst [vmem:[%s3200_s22 + $0xb8] sm:$0xff] %v1789_v55  ;;  %v1633_v60 = vadd.f32 %v2243_v58, %v1409_v10  ;;  %v1733_v61 = vadd.f32 %v2273_v59, %v1509_v30  ;;  %v1627_v62 = vpop.f32.mrb[21].mxu0  ;;  %v1727_v63 = vpop.f32.mrb[29].mxu1 }
 0x4be   : > { %1800 = vst [vmem:[%s3200_s22 + $0x10] sm:$0xff] %v1768_v56  ;;  %1820 = vst [vmem:[%s3200_s22 + $0xb0] sm:$0xff] %v1788_v57  ;;  %v1628_v0 = vadd.f32 %v1627_v62, %v3167_v11  ;;  %v1728_v1 = vadd.f32 %v1727_v63, %v1504_v31 }
 0x4bf   : > { %v1771_v4 = vmax.f32 %v1633_v60, 0.0  ;;  %v1791_v5 = vmax.f32 %v1733_v61, 0.0 }
 0x4c0   : > { %v1770_v6 = vmax.f32 %v1628_v0, 0.0  ;;  %v1790_v7 = vmax.f32 %v1728_v1, 0.0  ;;  %v2246_v8 = vpop.f32.mrb[22].mxu0  ;;  %v2276_v9 = vpop.f32.mrb[30].mxu1 }
 0x4c1   : > { %1803 = vst [vmem:[%s3200_s22 + $0x28] sm:$0xff] %v1771_v4  ;;  %1823 = vst [vmem:[%s3200_s22 + $0xc8] sm:$0xff] %v1791_v5  ;;  %v1643_v10 = vadd.f32 %v2246_v8, %v3169_v12  ;;  %v1743_v26 = vadd.f32 %v2276_v9, %v1519_v40  ;;  %v1637_v27 = vpop.f32.mrb[23].mxu0  ;;  %v1737_v11 = vpop.f32.mrb[31].mxu1 }
 0x4c2   : > { %1802 = vst [vmem:[%s3200_s22 + $0x20] sm:$0xff] %v1770_v6  ;;  %1822 = vst [vmem:[%s3200_s22 + $0xc0] sm:$0xff] %v1790_v7  ;;  %v1638_v28 = vadd.f32 %v1637_v27, %v3171_v13  ;;  %v1738_v29 = vadd.f32 %v1737_v11, %v1514_v41  ;;  %v1539_v40 = vpop.permute.xlu1 %1538  ;;  %v1534_v41 = vpop.permute.xlu0 %1533 }
 0x4c3   : > { %v1773_v30 = vmax.f32 %v1643_v10, 0.0  ;;  %v1793_v31 = vmax.f32 %v1743_v26, 0.0 }
 0x4c4   : > { %v1772_v32 = vmax.f32 %v1638_v28, 0.0  ;;  %v1792_v33 = vmax.f32 %v1738_v29, 0.0  ;;  %v2249_v34 = vpop.f32.mrb[24].mxu0  ;;  %v2279_v35 = vpop.f32.mrb[32].mxu1 }
 0x4c5   : > { %1805 = vst [vmem:[%s3200_s22 + $0x38] sm:$0xff] %v1773_v30  ;;  %1825 = vst [vmem:[%s3200_s22 + $0xd8] sm:$0xff] %v1793_v31  ;;  %v1653_v12 = vadd.f32 %v2249_v34, %v3173_v14  ;;  %v1753_v36 = vadd.f32 %v2279_v35, %v1529_v2  ;;  %v1647_v37 = vpop.f32.mrb[25].mxu0  ;;  %v1747_v38 = vpop.f32.mrb[33].mxu1 }
 0x4c6   : > { %1804 = vst [vmem:[%s3200_s22 + $0x30] sm:$0xff] %v1772_v32  ;;  %1824 = vst [vmem:[%s3200_s22 + $0xd0] sm:$0xff] %v1792_v33  ;;  %v1648_v13 = vadd.f32 %v1647_v37, %v3175_v15  ;;  %v1748_v39 = vadd.f32 %v1747_v38, %v1524_v3 }
 0x4c7   : > { %v1775_v42 = vmax.f32 %v1653_v12, 0.0  ;;  %v1795_v43 = vmax.f32 %v1753_v36, 0.0 }
 0x4c8   : > { %v1774_v44 = vmax.f32 %v1648_v13, 0.0  ;;  %v1794_v45 = vmax.f32 %v1748_v39, 0.0  ;;  %v2252_v46 = vpop.f32.mrb[26].mxu0  ;;  %v2282_v14 = vpop.f32.mrb[34].mxu1 }
 0x4c9   : > { %1807 = vst [vmem:[%s3200_s22 + $0x48] sm:$0xff] %v1775_v42  ;;  %1827 = vst [vmem:[%s3200_s22 + $0xe8] sm:$0xff] %v1795_v43  ;;  %v1663_v47 = vadd.f32 %v2252_v46, %v3177_v16  ;;  %v1763_v48 = vadd.f32 %v2282_v14, %v1539_v40  ;;  %v1657_v15 = vpop.f32.mrb[27].mxu0  ;;  %v1757_v49 = vpop.f32.mrb[35].mxu1 }
 0x4ca   : > { %1806 = vst [vmem:[%s3200_s22 + $0x40] sm:$0xff] %v1774_v44  ;;  %1826 = vst [vmem:[%s3200_s22 + $0xe0] sm:$0xff] %v1794_v45  ;;  %v1658_v50 = vadd.f32 %v1657_v15, %v3179_v17  ;;  %v1758_v51 = vadd.f32 %v1757_v49, %v1534_v41 }
 0x4cb   : > { %v1777_v52 = vmax.f32 %v1663_v47, 0.0  ;;  %v1797_v53 = vmax.f32 %v1763_v48, 0.0 }
 0x4cc   : > { %v1776_v54 = vmax.f32 %v1658_v50, 0.0  ;;  %v1796_v55 = vmax.f32 %v1758_v51, 0.0  ;;  %v2255_v56 = vpop.f32.mrb[28].mxu0 }
 0x4cd   : > { %1809 = vst [vmem:[%s3200_s22 + $0x58] sm:$0xff] %v1777_v52  ;;  %1829 = vst [vmem:[%s3200_s22 + $0xf8] sm:$0xff] %v1797_v53  ;;  %v1673_v16 = vadd.f32 %v2255_v56, %v3181_v18  ;;  %v1667_v57 = vpop.f32.mrb[29].mxu0 }
 0x4ce   : > { %1808 = vst [vmem:[%s3200_s22 + $0x50] sm:$0xff] %v1776_v54  ;;  %1828 = vst [vmem:[%s3200_s22 + $0xf0] sm:$0xff] %v1796_v55  ;;  %v1668_v17 = vadd.f32 %v1667_v57, %v3183_v19 }
 0x4cf   : > { %v1779_v58 = vmax.f32 %v1673_v16, 0.0 }
 0x4d0   : > { %v1778_v59 = vmax.f32 %v1668_v17, 0.0  ;;  %v2258_v60 = vpop.f32.mrb[30].mxu0 }
 0x4d1   : > { %1811 = vst [vmem:[%s3200_s22 + $0x68] sm:$0xff] %v1779_v58  ;;  %v1683_v61 = vadd.f32 %v2258_v60, %v3185_v20  ;;  %v1677_v62 = vpop.f32.mrb[31].mxu0 }
 0x4d2   : > { %1810 = vst [vmem:[%s3200_s22 + $0x60] sm:$0xff] %v1778_v59  ;;  %v1678_v18 = vadd.f32 %v1677_v62, %v3187_v21 }
 0x4d3   : > { %v1781_v63 = vmax.f32 %v1683_v61, 0.0 }
 0x4d4   : > { %v1780_v0 = vmax.f32 %v1678_v18, 0.0  ;;  %v2261_v1 = vpop.f32.mrb[32].mxu0 }
 0x4d5   : > { %1813 = vst [vmem:[%s3200_s22 + $0x78] sm:$0xff] %v1781_v63  ;;  %v1693_v19 = vadd.f32 %v2261_v1, %v3189_v22  ;;  %v1687_v2 = vpop.f32.mrb[33].mxu0 }
 0x4d6   : > { %1812 = vst [vmem:[%s3200_s22 + $0x70] sm:$0xff] %v1780_v0  ;;  %v1688_v20 = vadd.f32 %v1687_v2, %v3191_v23 }
 0x4d7   : > { %v1783_v3 = vmax.f32 %v1693_v19, 0.0 }
 0x4d8   : > { %v1782_v4 = vmax.f32 %v1688_v20, 0.0  ;;  %v2264_v5 = vpop.f32.mrb[34].mxu0 }
 0x4d9   : > { %1815 = vst [vmem:[%s3200_s22 + $0x88] sm:$0xff] %v1783_v3  ;;  %v1703_v21 = vadd.f32 %v2264_v5, %v3193_v24  ;;  %v1697_v6 = vpop.f32.mrb[35].mxu0 }
 0x4da   : > { %1814 = vst [vmem:[%s3200_s22 + $0x80] sm:$0xff] %v1782_v4  ;;  %v1698_v22 = vadd.f32 %v1697_v6, %v3195_v25 }
 0x4db   : > { %v1785_v23 = vmax.f32 %v1703_v21, 0.0 }
 0x4dc   : > { %v1784_v7 = vmax.f32 %v1698_v22, 0.0 }
 0x4dd   : > { %1817 = vst [vmem:[%s3200_s22 + $0x98] sm:$0xff] %v1785_v23 }
 0x4de   : > { %1816 = vst [vmem:[%s3200_s22 + $0x90] sm:$0xff] %v1784_v7 }
 0x4df   : > { %2469 = shalt.err (!%p2466_p7)
}
 0x4e0   : > { %s2470_s28 = scalar_lea.hbm %s3253_s13, 4096  ;;  %s2474_s19 = scalar_lea.hbm %s3324_s11, 16384 }
 0x4e1   : > { %p2471_p9 = scmp.ne.s32.totalorder %s3253_s13, %s2470_s28  ;;  %p2475_p12 = scmp.lt.u32.totalorder %s3253_s13, %s3324_s11 }
 0x4e2   : > { %p2476_p13 = scmp.lt.u32.totalorder %s2474_s19, %s2470_s28  ;;  %p2478_p1 = scmp.lt.u32.totalorder %s2470_s28, %s3253_s13 }
 0x4e3   : > { %p2472_p10 = pnand %p2471_p9, %p2668_p3 }
 0x4e4   : > { %p2477_p0 = por %p2476_p13, %p2475_p12 }
 0x4e5   : > { %p2473_p11 = pneg %p2472_p10 }
 0x4e6   : > { %p2479_p2 = por %p2478_p1, %p2477_p0 }
 0x4e8   : > { %p2480_p4 = pnand %p2479_p2, %p2473_p11 }
 0x4ea   : > { %2483 = shalt.err (!%p2480_p4)
}
 0x4eb   : > { %s2554_s20 = smov 128   ;;  %s2555_s26 = smov 256  }
 0x4ec   : > { %s2556_s14 = smov 8  }
 0x4ed   : > { %2379 = dma.vmem_to_hbm [thread:$0]  (%p2668_p3), %s3255_s16, 4096, %s3253_s13, %s3261_s27, %s2554_s20, %s2555_s26, %s2556_s14  }
 0x4ee PF: > { %p2385_p5 = scmp.ge.s32.totalorder %s2550_s24, 2  ;;  %s1860_s25 = sand.u32 1, %s2522_s17  }
 0x4ef   : > { %s1861_s29 = scalar_lea.sflag [#allocation3], %s1860_s25 }
 0x4f0   : > { %p2382_p6 = pnand %p2385_p5, %p2677_p8 }
 0x4f2   : > { %2517 = dma.done.wait (!%p2382_p6), %s1861_s29, 4096  }
 0x4f3   : > { %2519 = vsyncadd (!%p2382_p6), %s1861_s29, 4294963200  ;;  %s24_s24 = sadd.s32 1, %s2550_s24   ;;  %s3341_s28 = sld [smem:[#allocation5_spill]] }
 0x4f4   : > { %p21_p7 = scmp.ge.s32.totalorder %s24_s24, 6   ;;  %s3342_s19 = sld [smem:[#allocation11_spill]] }
 0x4f5   : > { %s3343_s20 = sld [smem:[#allocation6_spill]]  ;;  %s3344_s21 = sld [smem:[#allocation7_spill]] }
 0x4f6   : > { %s3345_s22 = sld [smem:[#allocation8_spill]]  ;;  %s3346_s23 = sld [smem:[#allocation9_spill]] }
 0x4f7   : > { %s3347_s17 = smov %s2526_s18  ;;  %23 = sbr.rel (!%p21_p7) target bundleno = 5 (0x5), region = 99 }
 0x4f9   : > { %s3348_s18 = smov %s3341_s28 }
 0x4fe   :  { %1866 = vsyncpa [#allocation3], 1 }
 0x4ff   :  { %1868 = vsyncpa [#allocation3 + $0x1], 1 }

</bundles_post_ra>
